<compile_context>
chip_gen: v5e
topology: v5e:2x2
jax: 0.10.0
libtpu: 0.0.40
codegen_flags: <defaults>
</compile_context>

<pallas_src>
import functools

import jax
import jax.numpy as jnp
from jax.experimental import pallas as pl
from jax.experimental.pallas import tpu as pltpu


def block_kernel(x_ref, wqkv_ref, wo_ref, bo_ref,
                 w1_ref, b1_ref, w2_ref, b2_ref,
                 g1_ref, be1_ref, g2_ref, be2_ref,
                 o_ref, *, seq, n_head, head_size, n_embd, matmul_dtype):
    eps = 1e-5
    T, H, hs, C = seq, n_head, head_size, n_embd
    md = matmul_dtype

    x = x_ref[0].astype(jnp.float32)                                # (T, C)

    # ---- LayerNorm 1 (f32 elementwise) ----
    mu = jnp.mean(x, axis=-1, keepdims=True)
    var = jnp.mean((x - mu) ** 2, axis=-1, keepdims=True)
    xln = (x - mu) * jax.lax.rsqrt(var + eps)
    xln = xln * g1_ref[...] + be1_ref[...]

    # ---- Fused q/k/v projection: one (T, C) @ (C, 3C) MXU op ----
    qkv = jnp.dot(xln.astype(md), wqkv_ref[...].astype(md),
                  preferred_element_type=jnp.float32)               # (T, 3C)

    # Three static slices + one reshape each (heads stay packed on the lane
    # axis; no per-head slice/stack loop).
    q = qkv[:, 0 * C:1 * C].reshape(T, H, hs)
    k = qkv[:, 1 * C:2 * C].reshape(T, H, hs)
    v = qkv[:, 2 * C:3 * C].reshape(T, H, hs)

    # ---- Attention, batched over all heads at once ----
    scale = C ** (-0.5)          # PyTorch reference scales by n_embd, not head_size
    wei = jnp.einsum('qhd,khd->hqk', q, k,
                     preferred_element_type=jnp.float32) * scale    # (H, T, T)
    wei = wei - jnp.max(wei, axis=-1, keepdims=True)
    wei = jnp.exp(wei)
    # Exact reciprocal keeps the f32 1e-4 check; use approx=True with bf16.
    wei = wei * pl.reciprocal(jnp.sum(wei, axis=-1, keepdims=True))
    att = jnp.einsum('hqk,khd->qhd', wei, v,
                     preferred_element_type=jnp.float32)            # (T, H, hs)

    # ---- Output projection: one K=C matmul (att layout == torch.cat order) ----
    att = att.reshape(T, C)
    sa = jnp.dot(att.astype(md), wo_ref[...].astype(md),
                 preferred_element_type=jnp.float32) + bo_ref[...]  # (T, C)

    x1 = x + sa                                                     # residual 1

    # ---- LayerNorm 2 ----
    mu2 = jnp.mean(x1, axis=-1, keepdims=True)
    var2 = jnp.mean((x1 - mu2) ** 2, axis=-1, keepdims=True)
    x2ln = (x1 - mu2) * jax.lax.rsqrt(var2 + eps)
    x2ln = x2ln * g2_ref[...] + be2_ref[...]

    # ---- FeedForward: Linear(C, 4C) -> ReLU -> Linear(4C, C) ----
    h1 = jnp.dot(x2ln.astype(md), w1_ref[...].astype(md),
                 preferred_element_type=jnp.float32) + b1_ref[...]
    h1 = jnp.maximum(h1, 0.0)
    ff = jnp.dot(h1.astype(md), w2_ref[...].astype(md),
                 preferred_element_type=jnp.float32) + b2_ref[...]

    o_ref[0] = (x1 + ff).astype(o_ref.dtype)                        # residual 2


def transformer_block(x, params, *, n_head, matmul_dtype=jnp.float32):
    B, T, C = x.shape
    hs = C // n_head
    (wq, wk, wv, wo, bo, w1, b1, w2, b2, g1, be1, g2, be2) = params

    # Wrapper-side (pure layout) weight packing — done once, outside the kernel.
    wqkv = jnp.concatenate([wq, wk, wv], axis=1)       # (C, 3C) fused projection

    kernel = functools.partial(
        block_kernel, seq=T, n_head=n_head, head_size=hs,
        n_embd=C, matmul_dtype=matmul_dtype)

    weights = (wqkv, wo, bo, w1, b1, w2, b2, g1, be1, g2, be2)

    def resident(a):
        # Constant block index -> weight stays VMEM-resident across grid steps.
        zeros = (0,) * a.ndim
        return pl.BlockSpec(a.shape, lambda b, _z=zeros: _z)

    # Grid over the batch dimension (attention couples tokens within a
    # sequence, so a full sequence is the natural unit).  Marked "parallel"
    # so both v7x TensorCores get work.  At real model sizes also tile the
    # FFN K dimension / raise vmem_limit_bytes (v7x has 64 MiB VMEM).
    out = pl.pallas_call(
        kernel,
        out_shape=jax.ShapeDtypeStruct((B, T, C), x.dtype),
        grid_spec=pltpu.PrefetchScalarGridSpec(
            num_scalar_prefetch=0,
            grid=(B,),
            in_specs=[pl.BlockSpec((1, T, C), lambda b: (b, 0, 0))]
                     + [resident(a) for a in weights],
            out_specs=pl.BlockSpec((1, T, C), lambda b: (b, 0, 0)),
        ),
        compiler_params=pltpu.CompilerParams(
            dimension_semantics=("parallel",)),
    )(x, *weights)

    return out


def reference_block(x, params, *, n_head):
    """Pure-JAX reference replicating the PyTorch forward exactly."""
    (wq, wk, wv, wo, bo, w1, b1, w2, b2, g1, be1, g2, be2) = params
    B, T, C = x.shape
    hs = C // n_head
    eps = 1e-5

    def ln(z, g, b):
        mu = jnp.mean(z, axis=-1, keepdims=True)
        var = jnp.mean((z - mu) ** 2, axis=-1, keepdims=True)
        return (z - mu) / jnp.sqrt(var + eps) * g + b

    xln = ln(x, g1[0], be1[0])
    q = xln @ wq
    k = xln @ wk
    v = xln @ wv
    q = q.reshape(B, T, n_head, hs).transpose(0, 2, 1, 3)
    k = k.reshape(B, T, n_head, hs).transpose(0, 2, 1, 3)
    v = v.reshape(B, T, n_head, hs).transpose(0, 2, 1, 3)
    wei = jnp.einsum("bhqd,bhkd->bhqk", q, k) * (C ** -0.5)
    wei = jax.nn.softmax(wei, axis=-1)
    att = jnp.einsum("bhqk,bhkd->bhqd", wei, v)
    att = att.transpose(0, 2, 1, 3).reshape(B, T, C)
    sa = att @ wo + bo[0]
    x1 = x + sa
    x2ln = ln(x1, g2[0], be2[0])
    ff = jnp.maximum(x2ln @ w1 + b1[0], 0.0) @ w2 + b2[0]
    return x1 + ff


if __name__ == "__main__":
    B, T, C = 2, 8, 32
    n_head = 4
    hidden = 4 * C

    key = jax.random.PRNGKey(0)
    ks = jax.random.split(key, 16)

    def init(k, shape, scale):
        return jax.random.uniform(k, shape, jnp.float32, -1.0, 1.0) * scale

    # attention projections (per-head weights concatenated column-wise): (C, C)
    wq = init(ks[0], (C, C), C ** -0.5)
    wk = init(ks[1], (C, C), C ** -0.5)
    wv = init(ks[2], (C, C), C ** -0.5)
    # output projection
    wo = init(ks[3], (C, C), C ** -0.5)
    bo = init(ks[4], (1, C), C ** -0.5)
    # feed-forward
    w1 = init(ks[5], (C, hidden), C ** -0.5)
    b1 = init(ks[6], (1, hidden), C ** -0.5)
    w2 = init(ks[7], (hidden, C), hidden ** -0.5)
    b2 = init(ks[8], (1, C), hidden ** -0.5)
    # layer norms (PyTorch default init: gamma=1, beta=0)
    g1 = jnp.ones((1, C), jnp.float32)
    be1 = jnp.zeros((1, C), jnp.float32)
    g2 = jnp.ones((1, C), jnp.float32)
    be2 = jnp.zeros((1, C), jnp.float32)

    params = (wq, wk, wv, wo, bo, w1, b1, w2, b2, g1, be1, g2, be2)

    x = jax.random.normal(ks[9], (B, T, C), jnp.float32)

    # TODO(synk): nn.Dropout layers are identity at p=0.0 (eval mode) and are omitted.
    out = transformer_block(x, params, n_head=n_head)
    out = jax.block_until_ready(out)

    ref = reference_block(x, params, n_head=n_head)
    if not jnp.allclose(out, ref, atol=1e-4, rtol=1e-4):
        raise AssertionError("Pallas output does not match reference")

    print("KERNEL_OK")
</pallas_src>

<mosaic_0001>
module attributes {stable_mosaic.version = 11 : i64} {
  func.func @block_kernel(%arg0: i32, %arg1: memref<1x8x32xf32, #tpu.memory_space<vmem>>, %arg2: memref<32x96xf32, #tpu.memory_space<vmem>>, %arg3: memref<32x32xf32, #tpu.memory_space<vmem>>, %arg4: memref<1x32xf32, #tpu.memory_space<vmem>>, %arg5: memref<32x128xf32, #tpu.memory_space<vmem>>, %arg6: memref<1x128xf32, #tpu.memory_space<vmem>>, %arg7: memref<128x32xf32, #tpu.memory_space<vmem>>, %arg8: memref<1x32xf32, #tpu.memory_space<vmem>>, %arg9: memref<1x32xf32, #tpu.memory_space<vmem>>, %arg10: memref<1x32xf32, #tpu.memory_space<vmem>>, %arg11: memref<1x32xf32, #tpu.memory_space<vmem>>, %arg12: memref<1x32xf32, #tpu.memory_space<vmem>>, %arg13: memref<1x8x32xf32, #tpu.memory_space<vmem>>) attributes {dimension_semantics = [#tpu.dimension_semantics<parallel>], iteration_bounds = array<i64: 2>, scalar_prefetch = 0 : i64, scratch_operands = 0 : i64, tpu.core_type = #tpu.core_type<tc>, window_params = [{transform_indices = @transform_0, window_bounds = array<i64: 1, 8, 32>}, {pipeline_mode = #tpu.pipeline_mode<synchronous>, transform_indices = @transform_1, window_bounds = array<i64: 32, 96>}, {pipeline_mode = #tpu.pipeline_mode<synchronous>, transform_indices = @transform_2, window_bounds = array<i64: 32, 32>}, {pipeline_mode = #tpu.pipeline_mode<synchronous>, transform_indices = @transform_3, window_bounds = array<i64: 1, 32>}, {pipeline_mode = #tpu.pipeline_mode<synchronous>, transform_indices = @transform_4, window_bounds = array<i64: 32, 128>}, {pipeline_mode = #tpu.pipeline_mode<synchronous>, transform_indices = @transform_5, window_bounds = array<i64: 1, 128>}, {pipeline_mode = #tpu.pipeline_mode<synchronous>, transform_indices = @transform_6, window_bounds = array<i64: 128, 32>}, {pipeline_mode = #tpu.pipeline_mode<synchronous>, transform_indices = @transform_7, window_bounds = array<i64: 1, 32>}, {pipeline_mode = #tpu.pipeline_mode<synchronous>, transform_indices = @transform_8, window_bounds = array<i64: 1, 32>}, {pipeline_mode = #tpu.pipeline_mode<synchronous>, transform_indices = @transform_9, window_bounds = array<i64: 1, 32>}, {pipeline_mode = #tpu.pipeline_mode<synchronous>, transform_indices = @transform_10, window_bounds = array<i64: 1, 32>}, {pipeline_mode = #tpu.pipeline_mode<synchronous>, transform_indices = @transform_11, window_bounds = array<i64: 1, 32>}, {transform_indices = @transform_12, window_bounds = array<i64: 1, 8, 32>}]} {
    %c0 = arith.constant 0 : index
    %c0_0 = arith.constant 0 : index
    %c0_1 = arith.constant 0 : index
    %0 = vector.load %arg1[%c0, %c0_0, %c0_1] : memref<1x8x32xf32, #tpu.memory_space<vmem>>, vector<1x8x32xf32>
    %1 = vector.shape_cast %0 : vector<1x8x32xf32> to vector<8x32xf32>
    %cst = arith.constant dense<0.000000e+00> : vector<8xf32>
    %2 = vector.multi_reduction <add>, %1, %cst [1] : vector<8x32xf32> to vector<8xf32>
    %3 = vector.shape_cast %2 : vector<8xf32> to vector<8x1xf32>
    %cst_2 = arith.constant 3.200000e+01 : f32
    %4 = vector.broadcast %cst_2 : f32 to vector<8x1xf32>
    %5 = arith.divf %3, %4 : vector<8x1xf32>
    %6 = vector.broadcast %5 : vector<8x1xf32> to vector<8x32xf32>
    %7 = arith.subf %1, %6 : vector<8x32xf32>
    %8 = arith.mulf %7, %7 : vector<8x32xf32>
    %cst_3 = arith.constant dense<0.000000e+00> : vector<8xf32>
    %9 = vector.multi_reduction <add>, %8, %cst_3 [1] : vector<8x32xf32> to vector<8xf32>
    %10 = vector.shape_cast %9 : vector<8xf32> to vector<8x1xf32>
    %cst_4 = arith.constant 3.200000e+01 : f32
    %11 = vector.broadcast %cst_4 : f32 to vector<8x1xf32>
    %12 = arith.divf %10, %11 : vector<8x1xf32>
    %13 = vector.broadcast %5 : vector<8x1xf32> to vector<8x32xf32>
    %14 = arith.subf %1, %13 : vector<8x32xf32>
    %cst_5 = arith.constant 9.99999974E-6 : f32
    %15 = vector.broadcast %cst_5 : f32 to vector<8x1xf32>
    %16 = arith.addf %12, %15 : vector<8x1xf32>
    %17 = math.rsqrt %16 : vector<8x1xf32>
    %18 = vector.broadcast %17 : vector<8x1xf32> to vector<8x32xf32>
    %19 = arith.mulf %14, %18 : vector<8x32xf32>
    %c0_6 = arith.constant 0 : index
    %c0_7 = arith.constant 0 : index
    %20 = vector.load %arg9[%c0_6, %c0_7] : memref<1x32xf32, #tpu.memory_space<vmem>>, vector<1x32xf32>
    %21 = vector.broadcast %20 : vector<1x32xf32> to vector<8x32xf32>
    %22 = arith.mulf %19, %21 : vector<8x32xf32>
    %c0_8 = arith.constant 0 : index
    %c0_9 = arith.constant 0 : index
    %23 = vector.load %arg10[%c0_8, %c0_9] : memref<1x32xf32, #tpu.memory_space<vmem>>, vector<1x32xf32>
    %24 = vector.broadcast %23 : vector<1x32xf32> to vector<8x32xf32>
    %25 = arith.addf %22, %24 : vector<8x32xf32>
    %c0_10 = arith.constant 0 : index
    %c0_11 = arith.constant 0 : index
    %26 = vector.load %arg2[%c0_10, %c0_11] : memref<32x96xf32, #tpu.memory_space<vmem>>, vector<32x96xf32>
    %cst_12 = arith.constant dense<0.000000e+00> : vector<8x96xf32>
    %27 = tpu.matmul %25, %26, %cst_12 {dimension_numbers = #tpu.dot_dimension_numbers<[1], [0], [0], [1], [0, 0, 1, 1], [], []>} : vector<8x32xf32>, vector<32x96xf32>, vector<8x96xf32> -> vector<8x96xf32>
    %28 = vector.extract_strided_slice %27 {offsets = [0, 0], sizes = [8, 32], strides = [1, 1]} : vector<8x96xf32> to vector<8x32xf32>
    %29 = vector.shape_cast %28 : vector<8x32xf32> to vector<8x4x8xf32>
    %30 = vector.extract_strided_slice %27 {offsets = [0, 32], sizes = [8, 32], strides = [1, 1]} : vector<8x96xf32> to vector<8x32xf32>
    %31 = vector.shape_cast %30 : vector<8x32xf32> to vector<8x4x8xf32>
    %32 = vector.extract_strided_slice %27 {offsets = [0, 64], sizes = [8, 32], strides = [1, 1]} : vector<8x96xf32> to vector<8x32xf32>
    %33 = vector.shape_cast %32 : vector<8x32xf32> to vector<8x4x8xf32>
    "tpu.trace_start"() <{level = 10 : i32, message = "qhd,khd->hqk"}> : () -> ()
    %cst_13 = arith.constant dense<0.000000e+00> : vector<4x8x8xf32>
    %34 = tpu.matmul %29, %31, %cst_13 {dimension_numbers = #tpu.dot_dimension_numbers<[2], [2], [0], [0], [0, 1, 0, 0, 1, 0], [1], [1]>} : vector<8x4x8xf32>, vector<8x4x8xf32>, vector<4x8x8xf32> -> vector<4x8x8xf32>
    "tpu.trace_stop"() : () -> ()
    %cst_14 = arith.constant 0.176776692 : f32
    %35 = vector.broadcast %cst_14 : f32 to vector<4x8x8xf32>
    %36 = arith.mulf %34, %35 : vector<4x8x8xf32>
    %cst_15 = arith.constant dense<0xFF800000> : vector<4x8xf32>
    %37 = vector.multi_reduction <maximumf>, %36, %cst_15 [2] : vector<4x8x8xf32> to vector<4x8xf32>
    %38 = vector.shape_cast %37 : vector<4x8xf32> to vector<4x8x1xf32>
    %39 = vector.broadcast %38 : vector<4x8x1xf32> to vector<4x8x8xf32>
    %40 = arith.subf %36, %39 : vector<4x8x8xf32>
    %41 = math.exp %40 : vector<4x8x8xf32>
    %cst_16 = arith.constant dense<0.000000e+00> : vector<4x8xf32>
    %42 = vector.multi_reduction <add>, %41, %cst_16 [2] : vector<4x8x8xf32> to vector<4x8xf32>
    %43 = vector.shape_cast %42 : vector<4x8xf32> to vector<4x8x1xf32>
    %44 = tpu.reciprocal %43 : vector<4x8x1xf32> -> vector<4x8x1xf32>
    %45 = vector.broadcast %44 : vector<4x8x1xf32> to vector<4x8x8xf32>
    %46 = arith.mulf %41, %45 : vector<4x8x8xf32>
    "tpu.trace_start"() <{level = 10 : i32, message = "hqk,khd->qhd"}> : () -> ()
    %cst_17 = arith.constant dense<0.000000e+00> : vector<4x8x8xf32>
    %47 = tpu.matmul %33, %46, %cst_17 {dimension_numbers = #tpu.dot_dimension_numbers<[0], [2], [2], [1], [0, 1, 0, 2, 1, 1], [1], [0]>} : vector<8x4x8xf32>, vector<4x8x8xf32>, vector<4x8x8xf32> -> vector<4x8x8xf32>
    %48 = tpu.transpose %47, [2, 0, 1] : vector<4x8x8xf32> -> vector<8x4x8xf32>
    "tpu.trace_stop"() : () -> ()
    %49 = vector.shape_cast %48 : vector<8x4x8xf32> to vector<8x32xf32>
    %c0_18 = arith.constant 0 : index
    %c0_19 = arith.constant 0 : index
    %50 = vector.load %arg3[%c0_18, %c0_19] : memref<32x32xf32, #tpu.memory_space<vmem>>, vector<32x32xf32>
    %cst_20 = arith.constant dense<0.000000e+00> : vector<8x32xf32>
    %51 = tpu.matmul %49, %50, %cst_20 {dimension_numbers = #tpu.dot_dimension_numbers<[1], [0], [0], [1], [0, 0, 1, 1], [], []>} : vector<8x32xf32>, vector<32x32xf32>, vector<8x32xf32> -> vector<8x32xf32>
    %c0_21 = arith.constant 0 : index
    %c0_22 = arith.constant 0 : index
    %52 = vector.load %arg4[%c0_21, %c0_22] : memref<1x32xf32, #tpu.memory_space<vmem>>, vector<1x32xf32>
    %53 = vector.broadcast %52 : vector<1x32xf32> to vector<8x32xf32>
    %54 = arith.addf %51, %53 : vector<8x32xf32>
    %55 = arith.addf %1, %54 : vector<8x32xf32>
    %cst_23 = arith.constant dense<0.000000e+00> : vector<8xf32>
    %56 = vector.multi_reduction <add>, %55, %cst_23 [1] : vector<8x32xf32> to vector<8xf32>
    %57 = vector.shape_cast %56 : vector<8xf32> to vector<8x1xf32>
    %cst_24 = arith.constant 3.200000e+01 : f32
    %58 = vector.broadcast %cst_24 : f32 to vector<8x1xf32>
    %59 = arith.divf %57, %58 : vector<8x1xf32>
    %60 = vector.broadcast %59 : vector<8x1xf32> to vector<8x32xf32>
    %61 = arith.subf %55, %60 : vector<8x32xf32>
    %62 = arith.mulf %61, %61 : vector<8x32xf32>
    %cst_25 = arith.constant dense<0.000000e+00> : vector<8xf32>
    %63 = vector.multi_reduction <add>, %62, %cst_25 [1] : vector<8x32xf32> to vector<8xf32>
    %64 = vector.shape_cast %63 : vector<8xf32> to vector<8x1xf32>
    %cst_26 = arith.constant 3.200000e+01 : f32
    %65 = vector.broadcast %cst_26 : f32 to vector<8x1xf32>
    %66 = arith.divf %64, %65 : vector<8x1xf32>
    %67 = vector.broadcast %59 : vector<8x1xf32> to vector<8x32xf32>
    %68 = arith.subf %55, %67 : vector<8x32xf32>
    %cst_27 = arith.constant 9.99999974E-6 : f32
    %69 = vector.broadcast %cst_27 : f32 to vector<8x1xf32>
    %70 = arith.addf %66, %69 : vector<8x1xf32>
    %71 = math.rsqrt %70 : vector<8x1xf32>
    %72 = vector.broadcast %71 : vector<8x1xf32> to vector<8x32xf32>
    %73 = arith.mulf %68, %72 : vector<8x32xf32>
    %c0_28 = arith.constant 0 : index
    %c0_29 = arith.constant 0 : index
    %74 = vector.load %arg11[%c0_28, %c0_29] : memref<1x32xf32, #tpu.memory_space<vmem>>, vector<1x32xf32>
    %75 = vector.broadcast %74 : vector<1x32xf32> to vector<8x32xf32>
    %76 = arith.mulf %73, %75 : vector<8x32xf32>
    %c0_30 = arith.constant 0 : index
    %c0_31 = arith.constant 0 : index
    %77 = vector.load %arg12[%c0_30, %c0_31] : memref<1x32xf32, #tpu.memory_space<vmem>>, vector<1x32xf32>
    %78 = vector.broadcast %77 : vector<1x32xf32> to vector<8x32xf32>
    %79 = arith.addf %76, %78 : vector<8x32xf32>
    %c0_32 = arith.constant 0 : index
    %c0_33 = arith.constant 0 : index
    %80 = vector.load %arg5[%c0_32, %c0_33] : memref<32x128xf32, #tpu.memory_space<vmem>>, vector<32x128xf32>
    %cst_34 = arith.constant dense<0.000000e+00> : vector<8x128xf32>
    %81 = tpu.matmul %79, %80, %cst_34 {dimension_numbers = #tpu.dot_dimension_numbers<[1], [0], [0], [1], [0, 0, 1, 1], [], []>} : vector<8x32xf32>, vector<32x128xf32>, vector<8x128xf32> -> vector<8x128xf32>
    %c0_35 = arith.constant 0 : index
    %c0_36 = arith.constant 0 : index
    %82 = vector.load %arg6[%c0_35, %c0_36] : memref<1x128xf32, #tpu.memory_space<vmem>>, vector<1x128xf32>
    %83 = vector.broadcast %82 : vector<1x128xf32> to vector<8x128xf32>
    %84 = arith.addf %81, %83 : vector<8x128xf32>
    %cst_37 = arith.constant 0.000000e+00 : f32
    %85 = vector.broadcast %cst_37 : f32 to vector<8x128xf32>
    %86 = arith.maximumf %84, %85 : vector<8x128xf32>
    %c0_38 = arith.constant 0 : index
    %c0_39 = arith.constant 0 : index
    %87 = vector.load %arg7[%c0_38, %c0_39] : memref<128x32xf32, #tpu.memory_space<vmem>>, vector<128x32xf32>
    %cst_40 = arith.constant dense<0.000000e+00> : vector<8x32xf32>
    %88 = tpu.matmul %86, %87, %cst_40 {dimension_numbers = #tpu.dot_dimension_numbers<[1], [0], [0], [1], [0, 0, 1, 1], [], []>} : vector<8x128xf32>, vector<128x32xf32>, vector<8x32xf32> -> vector<8x32xf32>
    %c0_41 = arith.constant 0 : index
    %c0_42 = arith.constant 0 : index
    %89 = vector.load %arg8[%c0_41, %c0_42] : memref<1x32xf32, #tpu.memory_space<vmem>>, vector<1x32xf32>
    %90 = vector.broadcast %89 : vector<1x32xf32> to vector<8x32xf32>
    %91 = arith.addf %88, %90 : vector<8x32xf32>
    %92 = arith.addf %55, %91 : vector<8x32xf32>
    %c0_43 = arith.constant 0 : index
    %c0_44 = arith.constant 0 : index
    %c0_45 = arith.constant 0 : index
    %93 = vector.load %arg13[%c0_43, %c0_44, %c0_45] : memref<1x8x32xf32, #tpu.memory_space<vmem>>, vector<1x8x32xf32>
    %94 = vector.shape_cast %93 : vector<1x8x32xf32> to vector<8x32xf32>
    %95 = vector.shape_cast %92 : vector<8x32xf32> to vector<1x8x32xf32>
    tpu.vector_store %arg13[%c0_43, %c0_44, %c0_45], %95 {strides = array<i32>} : memref<1x8x32xf32, #tpu.memory_space<vmem>>, vector<1x8x32xf32>,
    return
  }
  func.func @transform_0(%arg0: i32) -> (i32, i32, i32) {
    %c0_i32 = arith.constant 0 : i32
    %c0_i32_0 = arith.constant 0 : i32
    %c0_i32_1 = arith.constant 0 : i32
    return %arg0, %c0_i32, %c0_i32_0 : i32, i32, i32
  }
  func.func @transform_1(%arg0: i32) -> (i32, i32) {
    %c0_i32 = arith.constant 0 : i32
    %c0_i32_0 = arith.constant 0 : i32
    %c0_i32_1 = arith.constant 0 : i32
    return %c0_i32, %c0_i32_0 : i32, i32
  }
  func.func @transform_2(%arg0: i32) -> (i32, i32) {
    %c0_i32 = arith.constant 0 : i32
    %c0_i32_0 = arith.constant 0 : i32
    %c0_i32_1 = arith.constant 0 : i32
    return %c0_i32, %c0_i32_0 : i32, i32
  }
  func.func @transform_3(%arg0: i32) -> (i32, i32) {
    %c0_i32 = arith.constant 0 : i32
    %c0_i32_0 = arith.constant 0 : i32
    %c0_i32_1 = arith.constant 0 : i32
    return %c0_i32, %c0_i32_0 : i32, i32
  }
  func.func @transform_4(%arg0: i32) -> (i32, i32) {
    %c0_i32 = arith.constant 0 : i32
    %c0_i32_0 = arith.constant 0 : i32
    %c0_i32_1 = arith.constant 0 : i32
    return %c0_i32, %c0_i32_0 : i32, i32
  }
  func.func @transform_5(%arg0: i32) -> (i32, i32) {
    %c0_i32 = arith.constant 0 : i32
    %c0_i32_0 = arith.constant 0 : i32
    %c0_i32_1 = arith.constant 0 : i32
    return %c0_i32, %c0_i32_0 : i32, i32
  }
  func.func @transform_6(%arg0: i32) -> (i32, i32) {
    %c0_i32 = arith.constant 0 : i32
    %c0_i32_0 = arith.constant 0 : i32
    %c0_i32_1 = arith.constant 0 : i32
    return %c0_i32, %c0_i32_0 : i32, i32
  }
  func.func @transform_7(%arg0: i32) -> (i32, i32) {
    %c0_i32 = arith.constant 0 : i32
    %c0_i32_0 = arith.constant 0 : i32
    %c0_i32_1 = arith.constant 0 : i32
    return %c0_i32, %c0_i32_0 : i32, i32
  }
  func.func @transform_8(%arg0: i32) -> (i32, i32) {
    %c0_i32 = arith.constant 0 : i32
    %c0_i32_0 = arith.constant 0 : i32
    %c0_i32_1 = arith.constant 0 : i32
    return %c0_i32, %c0_i32_0 : i32, i32
  }
  func.func @transform_9(%arg0: i32) -> (i32, i32) {
    %c0_i32 = arith.constant 0 : i32
    %c0_i32_0 = arith.constant 0 : i32
    %c0_i32_1 = arith.constant 0 : i32
    return %c0_i32, %c0_i32_0 : i32, i32
  }
  func.func @transform_10(%arg0: i32) -> (i32, i32) {
    %c0_i32 = arith.constant 0 : i32
    %c0_i32_0 = arith.constant 0 : i32
    %c0_i32_1 = arith.constant 0 : i32
    return %c0_i32, %c0_i32_0 : i32, i32
  }
  func.func @transform_11(%arg0: i32) -> (i32, i32) {
    %c0_i32 = arith.constant 0 : i32
    %c0_i32_0 = arith.constant 0 : i32
    %c0_i32_1 = arith.constant 0 : i32
    return %c0_i32, %c0_i32_0 : i32, i32
  }
  func.func @transform_12(%arg0: i32) -> (i32, i32, i32) {
    %c0_i32 = arith.constant 0 : i32
    %c0_i32_0 = arith.constant 0 : i32
    %c0_i32_1 = arith.constant 0 : i32
    return %arg0, %c0_i32, %c0_i32_0 : i32, i32, i32
  }
}

</mosaic_0001>

<bundles_post_ra>
// kernel: tpu_custom_call.1
= control target key start
LH: loop header
LB: loop body
LE: loop exit
PB: predicated region body
PF: predicated region fallthrough
CT: control target
= control target key end

     0   :  { %s2063_s0 = inlined_call_operand.vmem [shape: f32[2,8,32], index: 0, kind: input, shape index: {}]   ;;  %s2064_s1 = inlined_call_operand.vmem [shape: f32[32,96], index: 1, kind: input, shape index: {}]   ;;  %s2065_s2 = inlined_call_operand.vmem [shape: f32[32,32], index: 2, kind: input, shape index: {}]   ;;  %s2066_s3 = inlined_call_operand.vmem [shape: f32[1,32], index: 3, kind: input, shape index: {}]   ;;  %s2067_s4 = inlined_call_operand.vmem [shape: f32[32,128], index: 4, kind: input, shape index: {}]   ;;  %s2068_s5 = inlined_call_operand.vmem [shape: f32[1,128], index: 5, kind: input, shape index: {}]   ;;  %s2069_s6 = inlined_call_operand.vmem [shape: f32[128,32], index: 6, kind: input, shape index: {}]   ;;  %s2070_s7 = inlined_call_operand.vmem [shape: f32[1,32], index: 7, kind: input, shape index: {}]   ;;  %s2071_s8 = inlined_call_operand.vmem [shape: f32[1,32], index: 8, kind: input, shape index: {}]   ;;  %s2072_s9 = inlined_call_operand.vmem [shape: f32[1,32], index: 9, kind: input, shape index: {}]   ;;  %s2073_s10 = inlined_call_operand.vmem [shape: f32[1,32], index: 10, kind: input, shape index: {}]   ;;  %s2074_s11 = inlined_call_operand.vmem [shape: f32[1,32], index: 11, kind: input, shape index: {}]   ;;  %s2075_s12 = inlined_call_operand.hbm [shape: f32[2,8,32], index: 12, kind: output, shape index: {}]  }
   0x1   :  { %2076 = sst [smem:[#allocation5_spill]] %s2063_s0 }
   0x2   :  { %2077 = sst [smem:[#allocation6_spill]] %s2064_s1 }
   0x3   :  { %2078 = sst [smem:[#allocation7_spill]] %s2065_s2 }
   0x4   :  { %17 = vsyncpa [#allocation3], 0 }
   0x5   :  { %19 = vsyncpa [#allocation3 + $0x1], 0  ;;  %s1783_s21 = smov 0   ;;  %s1785_s22 = smov 0  }
   0x6   :  { %s1787_s23 = smov 0   ;;  %s1789_s24 = smov 0  }
   0x7 LB: > { %s1804_s25 = sadd.s32 4294967295, %s1705_s24   ;;  %s1526_s26 = sadd.s32 4294967294, %s1705_s24   ;;  %s1705_s24 = sphi %s1789_s24, %s2087_s24   ;;  %s1701_s23 = sphi %s1787_s23, %s2086_s23   ;;  %s1697_s22 = sphi %s1785_s22, %s2085_s22   ;;  %s1693_s21 = sphi %s1783_s21, %s2084_s21  }
   0x8   : > { %s1808_s27 = sadd.s32 1, %s1705_s24   ;;  %s289_s28 = sadd.s32 1, %s1701_s23 }
   0x9   : > { %s286_s29 = ssub.s32 %s1705_s24, %s1808_s27  ;;  %p299_p0 = scmp.ne.s32.totalorder %s1701_s23, %s1697_s22 }
   0xa   : > { %p287_p1 = scmp.eq.s32.totalorder %s286_s29, 0  ;;  %p300_p2 = scmp.eq.s32.totalorder %s1804_s25, 1 }
   0xb   : > { %p305_p3 = scmp.ne.s32.totalorder %s1697_s22, %s1693_s21  ;;  %p306_p4 = scmp.eq.s32.totalorder %s1526_s26, 1 }
   0xc   : > { %s1819_s30 = scalar_select %p287_p1, %s1701_s23, %s289_s28  }
   0xd   : > { %p1821_p5 = por %p300_p2, %p299_p0  ;;  %p1825_p6 = por %p306_p4, %p305_p3 }
   0xe   : > { %p1529_p7 = scmp.ge.s32.totalorder %s1705_s24, 1  ;;  %p364_p8 = scmp.lt.s32.totalorder %s1705_s24, 3 }
  0x10   : > { %p365_p9 = pnand %p1529_p7, %p364_p8 }
  0x11   : > { %p405_p10 = scmp.lt.s32.totalorder (!%p365_p9), %s1804_s25, 1  ;;  %s2081_s0 = sld [smem:[#allocation5_spill]] (!%p365_p9) }
  0x12   : > { %368 = sbr.rel (%p365_p9) target bundleno = 2488 (0x9b8), region = 68  ;;  %s2082_s1 = sld [smem:[#allocation6_spill]] (!%p365_p9) }
  0x13   : > { %s1708_s29 = smov (!%p365_p9), 104   ;;  %s1711_s17 = smov (!%p365_p9), 96  }
  0x14   : > { %s1712_s18 = smov (!%p365_p9), 64   ;;  %s1716_s20 = smov (!%p365_p9), 16  }
  0x15   : > { %s1717_s26 = smov (!%p365_p9), 8   ;;  %s2083_s2 = sld [smem:[#allocation7_spill]] (!%p365_p9) }
  0x17   : > { %s406_s15 = scalar_select %p405_p10, %s1804_s25, 1  ;;  %vm410_vm0 = vcmask 261120   ;;  %v1707_v2 = vmov 32.0   ;;  %v1614_v27 = vld [vmem:[%s2071_s8] ss:$0 sm:$0xff]  ;;  %vm624_vm5 = vcmask 64512  }
  0x18   : > { %1621 = vrcp.f32 %v1707_v2  ;;  %v453_v14 = vld [vmem:[%s2082_s1 + $0x18] sm:$0xff]  ;;  %v452_v15 = vld [vmem:[%s2082_s1 + $0x10] sm:$0xff]  ;;  %v451_v16 = vld [vmem:[%s2082_s1 + $0x8] sm:$0xff] }
  0x19   : > { %s1531_s16 = sshll.u32 %s406_s15, 3  ;;  %469 = vmatpush.msra.mxu1 %v453_v14  ;;  %v450_v17 = vld [vmem:[%s2082_s1] sm:$0xff]  ;;  %s1709_s15 = smov 112  }
  0x1a   : > { %s408_s19 = scalar_lea.vmem %s2081_s0, %s1531_s16  ;;  %v1615_v30 = vld [vmem:[%s2072_s9] ss:$0 sm:$0xff]  ;;  %s1710_s16 = smov 120  }
  0x1b   : > { %v1836_v0 = vld [vmem:[%s408_s19] sm:$0xff]  ;;  %470 = vmatpush.msra.mxu1 %v452_v15  ;;  %s1715_s19 = smov 24   ;;  %s402_s0 = sand.u32 1, %s1697_s22  }
  0x1c   : > { %v411_v1 = vsel %vm410_vm0, %v1836_v0, 0.0 }
  0x1d   : > { %412 = vadd.xlane.f32.xlu0 %v411_v1  ;;  %471 = vmatpush.msra.mxu1 %v451_v16 }
  0x1e   : > { %v1622_v3 = vpop.eup %1621 }
  0x1f   : > { %v415_v4 = vmul.f32 32.0, %v1622_v3  ;;  %vm419_vm1 = vweird.f32 %v1622_v3  ;;  %472 = vmatpush.msra.mxu1 %v450_v17 }
  0x21   : > { %v416_v5 = vsub.f32 1.0, %v415_v4 }
  0x23   : > { %v417_v6 = vmul.f32 %v1622_v3, %v416_v5 }
  0x25   : > { %v418_v7 = vadd.f32 %v1622_v3, %v417_v6 }
  0x27   : > { %v1840_v8 = vsel %vm419_vm1, %v1622_v3, %v418_v7 }
  0x90   : > { %v413_v9 = vpop.xlane.xlu0 %412 }
  0x91   : > { %v421_v10 = vmul.f32 %v1840_v8, %v413_v9 }
  0x93   : > { %v422_v11 = vsub.f32 %v1836_v0, %v421_v10 }
  0x95   : > { %v423_v12 = vmul.f32 %v422_v11, %v422_v11 }
  0x97   : > { %v424_v13 = vsel %vm410_vm0, %v423_v12, 0.0 }
  0x98   : > { %425 = vadd.xlane.f32.xlu0 %v424_v13 }
 0x10b   : > { %v426_v18 = vpop.xlane.xlu0 %425 }
 0x10c   : > { %v427_v19 = vmul.f32 %v426_v18, %v1840_v8 }
 0x10e   : > { %v428_v20 = vadd.f32 1e-05, %v427_v19 }
 0x110   : > { %1623 = vrsqrt.f32 %v428_v20  ;;  %vm435_vm3 = vweird.f32 %v428_v20 }
 0x116   : > { %v1624_v21 = vpop.eup %1623 }
 0x117   : > { %v430_v22 = vmul.f32 %v1624_v21, %v428_v20  ;;  %vm436_vm2 = vweird.f32 %v1624_v21 }
 0x118   : > { %vm437_vm4 = vmor %vm435_vm3, %vm436_vm2 }
 0x119   : > { %v431_v23 = vmul.f32 %v1624_v21, %v430_v22 }
 0x11b   : > { %v432_v24 = vmul.f32 0.5, %v431_v23 }
 0x11d   : > { %v433_v25 = vsub.f32 1.5, %v432_v24 }
 0x11f   : > { %v434_v26 = vmul.f32 %v1624_v21, %v433_v25 }
 0x121   : > { %v438_v28 = vsel %vm437_vm4, %v1624_v21, %v434_v26 }
 0x122   : > { %v439_v29 = vmul.f32 %v438_v28, %v422_v11 }
 0x124   : > { %v444_v31 = vmul.f32 %v1614_v27, %v439_v29 }
 0x126   : > { %v449_v32 = vadd.f32 %v1615_v30, %v444_v31 }
 0x128   : > { %1532 = vmatmul.msk.f32.vlgmr.msra.gmra.mxu1 %vm410_vm0, %v449_v32 }
 0x1a5   : > { %v474_v33 = vpop.f32.mrf.mxu1 }
 0x1a6   : > { %482 = vrot.lane.b32.xlu2 %v474_v33, %s1708_s29  ;;  %480 = vrot.lane.b32.xlu1 %v474_v33, %s1709_s15 }
 0x1ae   : > { %478 = vrot.lane.b32.xlu1 %v474_v33, %s1710_s16 }
 0x200   : > { %v483_v34 = vpop.permute.xlu2 %482 }
 0x201   : > { %490 = vrot.lane.b32.xlu1 %v483_v34, %s1711_s17 }
 0x218   : > { %v481_v35 = vpop.permute.xlu1 %480 }
 0x219   : > { %v1602_v36 = vpack.i.bf16 %v481_v35, %v474_v33 }
 0x21b   : > { %1603 = vrot.lane.b32.xlu2 %v1602_v36, %s1711_s17 }
 0x220   : > { %v1865_v37 = vpop.permute.xlu1 %478 }
 0x221   : > { %486 = vrot.lane.b32.xlu0 %v1865_v37, %s1711_s17 }
 0x273   : > { %v491_v38 = vpop.permute.xlu1 %490 }
 0x274   : > { %592 = vxpose.xlu0.b32.start.end [1/1] (short) (narrow) %v491_v38, 8 }
 0x275   : > { %v1604_v39 = vpop.permute.xlu2 %1603 }
 0x276   : > { %1608 = vxpose.xlu2.b32.start.end [1/1] (short) (narrow) %v1604_v39, 8 }
 0x293   : > { %v487_v40 = vpop.permute.xlu0 %486 }
 0x294   : > { %528 = vxpose.xlu1.b32.start.end [1/1] (short) (narrow) %v487_v40, 8 }
 0x30f   : > { %v1609_v41 = vpop.trf.xlu2 }
 0x310   : > { %v1610_v42 = vunpack.i.l.bf16 %v1609_v41  ;;  %v1613_v43 = vunpack.i.h.bf16 %v1609_v41 }
 0x312   : > { %642 = vmatpush.msrb.mxu1 %v1610_v42  ;;  %686 = vmatpush.msra.mxu3 %v1613_v43 }
 0x313   : > { %1533 = vmatmul.msk.f32.vlgmr.msrb.gmra.mxu1 %vm624_vm5, %v474_v33  ;;  %1535 = vmatmul.msk.f32.vlgmr.msra.gmra.mxu3 %vm624_vm5, %v481_v35 }
 0x318   : > { %v608_v44 = vpop.trf.xlu0 }
 0x319   : > { %708 = vmatpush.msra.mxu1 %v608_v44 }
 0x31b   : > { %1536 = vmatmul.msk.f32.vlgmr.msra.gmra.mxu1 %vm624_vm5, %v483_v34 }
 0x338   : > { %v544_v45 = vpop.trf.xlu1 }
 0x339   : > { %664 = vmatpush.msra.mxu2 %v544_v45 }
 0x33a   : > { %1534 = vmatmul.msk.f32.vlgmr.msra.gmra.mxu2 %vm624_vm5, %v1865_v37 }
 0x390   : > { %v644_v46 = vpop.f32.mrf.mxu1 }
 0x391   : > { %v713_v47 = vmul.f32 0.17677669, %v644_v46 }
 0x393   : > { %v717_v48 = vsel %vm624_vm5, %v713_v47, -inf }
 0x394   : > { %718 = vmax.xlane.f32.xlu2 %v717_v48 }
 0x396   : > { %v688_v49 = vpop.f32.mrf.mxu3 }
 0x397   : > { %v715_v50 = vmul.f32 0.17677669, %v688_v49 }
 0x398   : > { %v710_v51 = vpop.f32.mrf.mxu1 }
 0x399   : > { %v716_v52 = vmul.f32 0.17677669, %v710_v51  ;;  %v723_v53 = vsel %vm624_vm5, %v715_v50, -inf }
 0x39a   : > { %724 = vmax.xlane.f32.xlu0 %v723_v53 }
 0x39b   : > { %v726_v54 = vsel %vm624_vm5, %v716_v52, -inf }
 0x39c   : > { %727 = vmax.xlane.f32.xlu2 %v726_v54 }
 0x3b4   : > { %813 = vrot.lane.b32.xlu2 %v474_v33, %s1712_s18 }
 0x3bc   : > { %819 = vrot.lane.b32.xlu2 %v483_v34, %s1712_s18 }
 0x3bd   : > { %v666_v55 = vpop.f32.mrf.mxu2 }
 0x3be   : > { %v714_v56 = vmul.f32 0.17677669, %v666_v55 }
 0x3c0   : > { %v720_v57 = vsel %vm624_vm5, %v714_v56, -inf }
 0x3c1   : > { %721 = vmax.xlane.f32.xlu1 %v720_v57 }
 0x3da   : > { %817 = vrot.lane.b32.xlu1 %v481_v35, %s1712_s18 }
 0x407   : > { %v719_v58 = vpop.xlane.xlu2 %718 }
 0x408   : > { %v729_v59 = vsub.f32 %v713_v47, %v719_v58 }
 0x40a   : > { %v733_v60 = vmul.f32 1.442695, %v729_v59 }
 0x40c   : > { %1625 = vpow2.f32 %v733_v60 }
 0x40d   : > { %v725_v61 = vpop.xlane.xlu0 %724 }
 0x40e   : > { %v731_v62 = vsub.f32 %v715_v50, %v725_v61 }
 0x40f   : > { %v728_v63 = vpop.xlane.xlu2 %727 }
 0x410   : > { %v737_v1 = vmul.f32 1.442695, %v731_v62  ;;  %v732_v2 = vsub.f32 %v716_v52, %v728_v63 }
 0x412   : > { %v1626_v3 = vpop.eup %1625  ;;  %1627 = vpow2.f32 %v737_v1  ;;  %v739_v4 = vmul.f32 1.442695, %v732_v2 }
 0x413   : > { %v741_v5 = vsel %vm624_vm5, %v1626_v3, 0.0 }
 0x414   : > { %1629 = vpow2.f32 %v739_v4  ;;  %742 = vadd.xlane.f32.xlu1 %v741_v5 }
 0x417   : > { %v814_v6 = vpop.permute.xlu2 %813 }
 0x418   : > { %v1881_v7 = vpop.eup %1627  ;;  %825 = vxpose.xlu2.b32.start.end [1/1] (short) (narrow) %v814_v6, 8 }
 0x419   : > { %v747_v11 = vsel %vm624_vm5, %v1881_v7, 0.0 }
 0x41a   : > { %v1883_v9 = vpop.eup %1629 }
 0x41b   : > { %v750_v10 = vsel %vm624_vm5, %v1883_v9, 0.0 }
 0x41c   : > { %751 = vadd.xlane.f32.xlu0 %v750_v10  ;;  %748 = vadd.xlane.f32.xlu1 %v747_v11 }
 0x41f   : > { %v820_v12 = vpop.permute.xlu2 %819 }
 0x420   : > { %921 = vxpose.xlu2.b32.start.end [1/1] (short) (narrow) %v820_v12, 8 }
 0x434   : > { %v722_v13 = vpop.xlane.xlu1 %721 }
 0x435   : > { %v730_v14 = vsub.f32 %v714_v56, %v722_v13 }
 0x437   : > { %v735_v15 = vmul.f32 1.442695, %v730_v14 }
 0x439   : > { %1631 = vpow2.f32 %v735_v15 }
 0x43f   : > { %v1889_v16 = vpop.eup %1631 }
 0x440   : > { %v744_v17 = vsel %vm624_vm5, %v1889_v16, 0.0 }
 0x441   : > { %745 = vadd.xlane.f32.xlu0 %v744_v17 }
 0x44c   : > { %v818_v18 = vpop.permute.xlu1 %817 }
 0x455   : > { %815 = vrot.lane.b32.xlu0 %v1865_v37, %s1712_s18 }
 0x456   : > { %889 = vxpose.xlu1.b32.start.end [1/1] (short) (narrow) %v818_v18, 8 }
 0x487   : > { %v743_v19 = vpop.xlane.xlu1 %742 }
 0x488   : > { %1633 = vrcp.f32 %v743_v19  ;;  %v764_v25 = vand.u32 2147483648, %v743_v19  ;;  %v762_v27 = vand.u32 2147483647, %v743_v19  ;;  %vm758_vm7 = vweird.f32 %v743_v19 }
 0x48a   : > { %v765_v30 = vor.u32 1.1754944e-38, %v764_v25  ;;  %vm763_vm9 = vcmp.eq.f32.partialorder %v762_v27, 8.507059e+37 }
 0x48e   : > { %v1634_v20 = vpop.eup %1633 }
 0x48f   : > { %v754_v21 = vmul.f32 %v1634_v20, %v743_v19  ;;  %v752_v22 = vpop.xlane.xlu0 %751  ;;  %v749_v23 = vpop.xlane.xlu1 %748  ;;  %vm759_vm6 = vweird.f32 %v1634_v20 }
 0x490   : > { %1635 = vrcp.f32 %v752_v22  ;;  %vm760_vm8 = vmor %vm758_vm7, %vm759_vm6  ;;  %v806_v38 = vand.u32 2147483648, %v752_v22  ;;  %v804_v41 = vand.u32 2147483647, %v752_v22  ;;  %v792_v42 = vand.u32 2147483648, %v749_v23 }
 0x491   : > { %v755_v24 = vsub.f32 1.0, %v754_v21  ;;  %1637 = vrcp.f32 %v749_v23  ;;  %v790_v44 = vand.u32 2147483647, %v749_v23  ;;  %vm800_vm12 = vweird.f32 %v752_v22 }
 0x492   : > { %v807_v46 = vor.u32 1.1754944e-38, %v806_v38  ;;  %vm786_vm14 = vweird.f32 %v749_v23  ;;  %vm805_vm15 = vcmp.eq.f32.partialorder %v804_v41, 8.507059e+37  ;;  %v793_v49 = vor.u32 1.1754944e-38, %v792_v42 }
 0x493   : > { %v756_v26 = vmul.f32 %v1634_v20, %v755_v24  ;;  %vm791_vm2 = vcmp.eq.f32.partialorder %v790_v44, 8.507059e+37  ;;  %v1714_v24 = vmov 1934713408  }
 0x494   : > { %v1215_v25 = vunpack.c.l.s4 %v1714_v24  ;;  %v1316_v24 = vld [vmem:[%s2083_s2 + $0x18] sm:$0xff] }
 0x495   : > { %v757_v28 = vadd.f32 %v1634_v20, %v756_v26 }
 0x496   : > { %v1636_v29 = vpop.eup %1635 }
 0x497   : > { %v1638_v31 = vpop.eup %1637  ;;  %v796_v32 = vmul.f32 %v1636_v29, %v752_v22  ;;  %v761_v33 = vsel %vm760_vm8, %v1634_v20, %v757_v28  ;;  %vm801_vm10 = vweird.f32 %v1636_v29  ;;  %vm1186_vm8 = vcmask 1047556  }
 0x498   : > { %v782_v34 = vmul.f32 %v1638_v31, %v749_v23  ;;  %v766_v35 = vsel %vm763_vm9, %v765_v30, %v761_v33  ;;  %vm787_vm11 = vweird.f32 %v1638_v31  ;;  %vm802_vm13 = vmor %vm800_vm12, %vm801_vm10  ;;  %v1216_v30 = vunpack.c.0.s8 %v1215_v25  ;;  %v1315_v25 = vld [vmem:[%s2083_s2 + $0x10] sm:$0xff] }
 0x499   : > { %v797_v36 = vsub.f32 1.0, %v796_v32  ;;  %v809_v37 = vmul.f32 %v1626_v3, %v766_v35  ;;  %vm788_vm1 = vmor %vm786_vm14, %vm787_vm11  ;;  %vm1309_vm9 = vcmask 130048   ;;  %vm1311_vm10 = vcmask 195584  }
 0x49a   : > { %v783_v39 = vsub.f32 1.0, %v782_v34 }
 0x49b   : > { %v798_v40 = vmul.f32 %v1636_v29, %v797_v36  ;;  %1537 = vmatpush.xpose.msk.msrb.mxu2 %vm624_vm5, %v809_v37 }
 0x49c   : > { %v784_v43 = vmul.f32 %v1638_v31, %v783_v39 }
 0x49d   : > { %v799_v45 = vadd.f32 %v1636_v29, %v798_v40 }
 0x49e   : > { %v785_v47 = vadd.f32 %v1638_v31, %v784_v43 }
 0x49f   : > { %v803_v48 = vsel %vm802_vm13, %v1636_v29, %v799_v45 }
 0x4a0   : > { %v808_v50 = vsel %vm805_vm15, %v807_v46, %v803_v48  ;;  %v789_v51 = vsel %vm788_vm1, %v1638_v31, %v785_v47 }
 0x4a1   : > { %v794_v52 = vsel %vm791_vm2, %v793_v49, %v789_v51  ;;  %v812_v53 = vmul.f32 %v1883_v9, %v808_v50 }
 0x4a2   : > { %v811_v54 = vmul.f32 %v1881_v7, %v794_v52 }
 0x4a3   : > { %1543 = vmatpush.xpose.msk.msrb.mxu1 %vm624_vm5, %v812_v53 }
 0x4a4   : > { %1541 = vmatpush.xpose.msk.msra.mxu2 %vm624_vm5, %v811_v54 }
 0x4b1   : > { %v841_v56 = vpop.trf.xlu2 }
 0x4b2   : > { %1538 = vmatmul.msk.f32.vlgmr.msrb.gmra.mxu2 %vm624_vm5, %v841_v56 }
 0x4b3   : > { %1336 = vmatpush.msrb.mxu2 %v1316_v24 }
 0x4b4   : > { %v746_v55 = vpop.xlane.xlu0 %745 }
 0x4b5   : > { %1639 = vrcp.f32 %v746_v55  ;;  %v778_v61 = vand.u32 2147483648, %v746_v55  ;;  %v776_v63 = vand.u32 2147483647, %v746_v55  ;;  %vm772_vm4 = vweird.f32 %v746_v55  ;;  %1337 = vmatpush.msrb.mxu2 %v1315_v25 }
 0x4b7   : > { %v779_v2 = vor.u32 1.1754944e-38, %v778_v61  ;;  %vm777_vm7 = vcmp.eq.f32.partialorder %v776_v63, 8.507059e+37 }
 0x4b9   : > { %v937_v59 = vpop.trf.xlu2 }
 0x4ba   : > { %1544 = vmatmul.msk.f32.vlgmr.msrb.gmra.mxu1 %vm624_vm5, %v937_v59 }
 0x4bb   : > { %v1640_v57 = vpop.eup %1639 }
 0x4bc   : > { %v768_v58 = vmul.f32 %v1640_v57, %v746_v55  ;;  %vm773_vm3 = vweird.f32 %v1640_v57 }
 0x4bd   : > { %vm774_vm6 = vmor %vm772_vm4, %vm773_vm3 }
 0x4be   : > { %v769_v60 = vsub.f32 1.0, %v768_v58 }
 0x4c0   : > { %v770_v62 = vmul.f32 %v1640_v57, %v769_v60 }
 0x4c2   : > { %v771_v1 = vadd.f32 %v1640_v57, %v770_v62 }
 0x4c4   : > { %v775_v3 = vsel %vm774_vm6, %v1640_v57, %v771_v1 }
 0x4c5   : > { %v780_v4 = vsel %vm777_vm7, %v779_v2, %v775_v3 }
 0x4c6   : > { %v810_v5 = vmul.f32 %v1889_v16, %v780_v4  ;;  %v1713_v16 = vmov 1983009808  }
 0x4c7   : > { %v816_v6 = vpop.permute.xlu0 %815  ;;  %v1191_v17 = vunpack.c.l.s4 %v1713_v16 }
 0x4c8   : > { %1539 = vmatpush.xpose.msk.msrb.mxu3 %vm624_vm5, %v810_v5  ;;  %857 = vxpose.xlu0.b32.start.end [1/1] (short) (narrow) %v816_v6, 8 }
 0x4c9   : > { %v1192_v21 = vunpack.c.0.s8 %v1191_v17 }
 0x4fa   : > { %v905_v7 = vpop.trf.xlu1 }
 0x4fb   : > { %1542 = vmatmul.msk.f32.vlgmr.msra.gmra.mxu2 %vm624_vm5, %v905_v7 }
 0x535   : > { %v976_v9 = vpop.f32.mrf.mxu2 }
 0x536   : > { %1057 = vxpose.xlu2.b32.start.end [1/1] (short) (narrow) %v976_v9, 8 }
 0x537   : > { %v1054_v10 = vpop.f32.mrf.mxu1 }
 0x538   : > { %1153 = vxpose.xlu0.b32.start.end [1/1] (short) (narrow) %v1054_v10, 8 }
 0x56c   : > { %v873_v11 = vpop.trf.xlu0 }
 0x56d   : > { %1540 = vmatmul.msk.f32.vlgmr.msrb.gmra.mxu3 %vm624_vm5, %v873_v11 }
 0x57e   : > { %v1028_v12 = vpop.f32.mrf.mxu2 }
 0x57f   : > { %1121 = vxpose.xlu0.b32.start.end [1/1] (short) (narrow) %v1028_v12, 8 }
 0x5cf   : > { %v1073_v18 = vpop.trf.xlu2 }
 0x5d0   : > { %v1188_v20 = vrot.slane %v1073_v18, 4 }
 0x5dc   : > { %v1169_v14 = vpop.trf.xlu0 }
 0x5dd   : > { %v1198_v27 = vrot.slane %v1169_v14, 4 }
 0x5f0   : > { %v1002_v13 = vpop.f32.mrf.mxu3 }
 0x5f1   : > { %1089 = vxpose.xlu2.b32.start.end [1/1] (short) (narrow) %v1002_v13, 8 }
 0x623   : > { %v1137_v15 = vpop.trf.xlu0 }
 0x624   : > { %v1185_v19 = vrot.slane %v1137_v15, 4  ;;  %v1189_v23 = vsel %vm1186_vm8, %v1137_v15, %v1188_v20 }
 0x625   : > { %v1197_v28 = vperm.slane %v1189_v23, %v1192_v21 }
 0x626   : > { %v1187_v22 = vsel %vm1186_vm8, %v1185_v19, %v1073_v18 }
 0x627   : > { %v1193_v26 = vperm.slane %v1187_v22, %v1192_v21  ;;  %v1224_v36 = vrot.slane %v1197_v28, 4 }
 0x629   : > { %v1212_v33 = vrot.slane %v1193_v26, 4 }
 0x68a   : > { %v1105_v29 = vpop.trf.xlu2 }
 0x68b   : > { %v1199_v31 = vsel %vm1186_vm8, %v1198_v27, %v1105_v29  ;;  %v1200_v32 = vrot.slane %v1105_v29, 4  ;;  %v1313_v27 = vld [vmem:[%s2083_s2] sm:$0xff] }
 0x68c   : > { %v1205_v34 = vperm.slane %v1199_v31, %v1192_v21 }
 0x68d   : > { %v1201_v35 = vsel %vm1186_vm8, %v1169_v14, %v1200_v32 }
 0x68e   : > { %v1209_v37 = vperm.slane %v1201_v35, %v1192_v21  ;;  %v1210_v38 = vrot.slane %v1205_v34, 4  ;;  %v1213_v39 = vsel %vm1186_vm8, %v1205_v34, %v1212_v33  ;;  %v1616_v34 = vld [vmem:[%s2066_s3] ss:$0 sm:$0xff] }
 0x68f   : > { %v1221_v40 = vperm.slane %v1213_v39, %v1216_v30 }
 0x690   : > { %v1211_v41 = vsel %vm1186_vm8, %v1210_v38, %v1193_v26  ;;  %v1222_v42 = vrot.slane %v1209_v37, 4  ;;  %v1225_v43 = vsel %vm1186_vm8, %v1209_v37, %v1224_v36  ;;  %v1314_v26 = vld [vmem:[%s2083_s2 + $0x8] sm:$0xff] }
 0x691   : > { %v1217_v44 = vperm.slane %v1211_v41, %v1216_v30  ;;  %v1233_v45 = vperm.slane %v1225_v43, %v1216_v30  ;;  %v1236_v46 = vrot.slane %v1221_v40, 4  ;;  %1338 = vmatpush.msrb.mxu2 %v1314_v26 }
 0x692   : > { %v1223_v47 = vsel %vm1186_vm8, %v1222_v42, %v1197_v28 }
 0x693   : > { %v1229_v48 = vperm.slane %v1223_v47, %v1216_v30  ;;  %v1234_v49 = vrot.slane %v1217_v44, 4  ;;  %v1237_v50 = vsel %vm1186_vm8, 0.0, %v1236_v46  ;;  %v1240_v51 = vrot.slane %v1233_v45, 4  ;;  %1339 = vmatpush.msrb.mxu2 %v1313_v27  ;;  %v1378_v45 = vld [vmem:[%s2067_s4 + $0x8] sm:$0xff]  ;;  %v1424_v47 = vld [vmem:[%s2069_s6 + $0x78] sm:$0xff] }
 0x694   : > { %v1242_v52 = vsel %vm1186_vm8, %v1236_v46, %v1217_v44  ;;  %v1247_v53 = vrot.slane %v1237_v50, 4  ;;  %v1380_v44 = vld [vmem:[%s2067_s4 + $0x18] sm:$0xff]  ;;  %v1377_v46 = vld [vmem:[%s2067_s4] sm:$0xff]  ;;  %1429 = vmatpush.msra.mxu0 %v1424_v47 }
 0x695   : > { %v1235_v54 = vsel %vm1186_vm8, 0.0, %v1234_v49  ;;  %v1238_v55 = vrot.slane %v1229_v48, 4  ;;  %v1241_v56 = vsel %vm1186_vm8, 0.0, %v1240_v51  ;;  %v1246_v57 = vperm.slane %v1242_v52, %v1192_v21  ;;  %1400 = vmatpush.msra.mxu3 %v1380_v44  ;;  %v1422_v49 = vld [vmem:[%s2069_s6 + $0x68] sm:$0xff]  ;;  %v1421_v52 = vld [vmem:[%s2069_s6 + $0x60] sm:$0xff] }
 0x696   : > { %v1258_v58 = vrot.slane %v1241_v56, 4  ;;  %v1248_v59 = vsel %vm1186_vm8, %v1247_v53, %v1235_v54  ;;  %v1253_v60 = vsel %vm1186_vm8, %v1240_v51, %v1229_v48  ;;  %v1423_v48 = vld [vmem:[%s2069_s6 + $0x70] sm:$0xff]  ;;  %v1420_v54 = vld [vmem:[%s2069_s6 + $0x58] sm:$0xff]  ;;  %v1417_v56 = vld [vmem:[%s2069_s6 + $0x40] sm:$0xff] }
 0x697   : > { %v1239_v61 = vsel %vm1186_vm8, 0.0, %v1238_v55  ;;  %v1252_v62 = vperm.slane %v1248_v59, %v1192_v21  ;;  %v1257_v63 = vperm.slane %v1253_v60, %v1192_v21  ;;  %v1266_v1 = vrot.slane %v1246_v57, 4  ;;  %1430 = vmatpush.msra.mxu0 %v1423_v48  ;;  %v1419_v55 = vld [vmem:[%s2069_s6 + $0x50] sm:$0xff] }
 0x698   : > { %v1259_v2 = vsel %vm1186_vm8, %v1258_v58, %v1239_v61  ;;  %v1416_v58 = vld [vmem:[%s2069_s6 + $0x38] sm:$0xff]  ;;  %v1415_v60 = vld [vmem:[%s2069_s6 + $0x30] sm:$0xff] }
 0x699   : > { %v1263_v3 = vperm.slane %v1259_v2, %v1192_v21  ;;  %v1267_v4 = vsel %vm1186_vm8, %v1252_v62, %v1266_v1  ;;  %v1278_v5 = vrot.slane %v1257_v63, 4  ;;  %v1264_v6 = vrot.slane %v1252_v62, 4  ;;  %1431 = vmatpush.msra.mxu0 %v1422_v49  ;;  %v1414_v62 = vld [vmem:[%s2069_s6 + $0x28] sm:$0xff]  ;;  %v1413_v1 = vld [vmem:[%s2069_s6 + $0x20] sm:$0xff] }
 0x69a   : > { %v1275_v7 = vperm.slane %v1267_v4, %v1216_v30 }
 0x69b   : > { %v1279_v9 = vsel %vm1186_vm8, %v1263_v3, %v1278_v5  ;;  %v1265_v10 = vsel %vm1186_vm8, %v1264_v6, %v1246_v57  ;;  %v1276_v11 = vrot.slane %v1263_v3, 4  ;;  %1432 = vmatpush.msra.mxu0 %v1421_v52  ;;  %v1412_v3 = vld [vmem:[%s2069_s6 + $0x18] sm:$0xff]  ;;  %v1617_v5 = vld [vmem:[%s2073_s10] ss:$0 sm:$0xff] }
 0x69c   : > { %v1287_v12 = vperm.slane %v1279_v9, %v1216_v30  ;;  %v1294_v13 = vrot.slane %v1275_v7, 4  ;;  %v1271_v14 = vperm.slane %v1265_v10, %v1216_v30  ;;  %v1618_v9 = vld [vmem:[%s2074_s11] ss:$0 sm:$0xff] }
 0x69d   : > { %v1277_v15 = vsel %vm1186_vm8, %v1276_v11, %v1257_v63  ;;  %1433 = vmatpush.msra.mxu0 %v1420_v54 }
 0x69e   : > { %v1295_v16 = vsel %vm1186_vm8, %v1287_v12, %v1294_v13  ;;  %v1292_v17 = vrot.slane %v1287_v12, 4  ;;  %v1283_v18 = vperm.slane %v1277_v15, %v1216_v30  ;;  %v1290_v19 = vrot.slane %v1271_v14, 4  ;;  %v1411_v12 = vld [vmem:[%s2069_s6 + $0x10] sm:$0xff]  ;;  %v1410_v13 = vld [vmem:[%s2069_s6 + $0x8] sm:$0xff]  ;;  %v1619_v15 = vld [vmem:[%s2068_s5] ss:$0 sm:$0xff] }
 0x69f   : > { %1305 = vrot.lane.b32.xlu2 %v1295_v16, %s1715_s19  ;;  %1434 = vmatpush.msra.mxu0 %v1419_v55 }
 0x6a0   : > { %v1293_v20 = vsel %vm1186_vm8, %v1292_v17, %v1275_v7  ;;  %v1288_v21 = vrot.slane %v1283_v18, 4  ;;  %v1291_v22 = vsel %vm1186_vm8, %v1283_v18, %v1290_v19  ;;  %v1620_v19 = vld [vmem:[%s2070_s7] ss:$0 sm:$0xff] }
 0x6a1   : > { %1301 = vrot.lane.b32.xlu0 %v1293_v20, %s1716_s20  ;;  %1297 = vrot.lane.b32.xlu1 %v1291_v22, %s1717_s26  ;;  %s1530_s20 = sshll.u32 %s402_s0, 3  ;;  %s1548_s26 = sshll.u32 %s1804_s25, 3 }
 0x6a2   : > { %v1289_v23 = vsel %vm1186_vm8, %v1288_v21, %v1271_v14  ;;  %v1409_v14 = vld [vmem:[%s2069_s6] sm:$0xff]  ;;  %s1462_s17 = scalar_lea.hbm %s2075_s12, %s1548_s26  ;;  %s404_s1 = scalar_lea.vmem [#allocation2], %s1530_s20 }
 0x6a3   : > { %s1464_s18 = sshll.u32 %s404_s1, 4  ;;  %s1466_s19 = sshll.u32 %s1462_s17, 4  ;;  %s1465_s18 = int_to_ptr.vmem [resolvable:$true] %s1464_s18  ;;  %s1467_s19 = int_to_ptr.hbm [resolvable:$true] %s1466_s19 }
 0x6a4   : > { %s1452_s25 = scalar_lea.sflag [#allocation3], %s402_s0  ;;  %s1657_s2 = sshra.s32 %s1467_s19, 4  ;;  %s1658_s2 = int_to_ptr.hbm [resolvable:$true] %s1657_s2 }
 0x6a5   : > { %s1659_s28 = scalar_lea.hbm %s1658_s2, 8  ;;  %s1663_s20 = scalar_lea.hbm %s2075_s12, 16 }
 0x6a6   : > { %p1660_p11 = scmp.ne.s32.totalorder %s1658_s2, %s1659_s28  ;;  %p1664_p0 = scmp.lt.s32.totalorder %s1658_s2, %s2075_s12 }
 0x6a7   : > { %p1665_p1 = scmp.lt.s32.totalorder %s1663_s20, %s1659_s28 }
 0x6a8   : > { %p1661_p12 = pnand %p1660_p11, %p1821_p5 }
 0x6a9   : > { %p1666_p2 = por %p1665_p1, %p1664_p0 }
 0x6aa   : > { %p1662_p13 = pneg %p1661_p12 }
 0x6ac   : > { %p1667_p3 = pnand %p1666_p2, %p1662_p13 }
 0x6f9   : > { %v1306_v31 = vpop.permute.xlu2 %1305 }
 0x713   : > { %v1302_v28 = vpop.permute.xlu0 %1301  ;;  %v1298_v29 = vpop.permute.xlu1 %1297 }
 0x714   : > { %v1308_v30 = vsel %vm624_vm5, %v1289_v23, %v1298_v29 }
 0x715   : > { %v1310_v32 = vsel %vm1309_vm9, %v1308_v30, %v1302_v28 }
 0x716   : > { %v1312_v33 = vsel %vm1311_vm10, %v1310_v32, %v1306_v31 }
 0x717   : > { %1545 = vmatmul.msk.f32.vlgmr.msrb.gmra.mxu2 %vm410_vm0, %v1312_v33 }
 0x79a   : > { %v1341_v35 = vpop.f32.mrf.mxu2 }
 0x79b   : > { %v1342_v36 = vadd.f32 %v1616_v34, %v1341_v35 }
 0x79d   : > { %v1948_v37 = vadd.f32 %v1342_v36, %v1836_v0  ;;  %v1379_v0 = vld [vmem:[%s2067_s4 + $0x10] sm:$0xff] }
 0x79e   : > { %1401 = vmatpush.msra.mxu3 %v1379_v0 }
 0x79f   : > { %v1345_v38 = vsel %vm410_vm0, %v1948_v37, 0.0 }
 0x7a0   : > { %1346 = vadd.xlane.f32.xlu1 %v1345_v38  ;;  %1402 = vmatpush.msra.mxu3 %v1378_v45 }
 0x7a2   : > { %1403 = vmatpush.msra.mxu3 %v1377_v46 }
 0x813   : > { %v1347_v39 = vpop.xlane.xlu1 %1346 }
 0x814   : > { %v1348_v40 = vmul.f32 %v1347_v39, %v1840_v8 }
 0x816   : > { %v1349_v41 = vsub.f32 %v1948_v37, %v1348_v40 }
 0x818   : > { %v1350_v42 = vmul.f32 %v1349_v41, %v1349_v41 }
 0x81a   : > { %v1351_v43 = vsel %vm410_vm0, %v1350_v42, 0.0 }
 0x81b   : > { %1352 = vadd.xlane.f32.xlu2 %v1351_v43 }
 0x88e   : > { %v1353_v50 = vpop.xlane.xlu2 %1352 }
 0x88f   : > { %v1354_v51 = vmul.f32 %v1353_v50, %v1840_v8  ;;  %v1418_v8 = vld [vmem:[%s2069_s6 + $0x48] sm:$0xff] }
 0x890   : > { %1435 = vmatpush.msra.mxu0 %v1418_v8 }
 0x891   : > { %v1355_v53 = vadd.f32 1e-05, %v1354_v51 }
 0x892   : > { %1436 = vmatpush.msra.mxu0 %v1417_v56 }
 0x893   : > { %1641 = vrsqrt.f32 %v1355_v53  ;;  %vm1362_vm11 = vweird.f32 %v1355_v53 }
 0x894   : > { %1437 = vmatpush.msra.mxu0 %v1416_v58 }
 0x896   : > { %1438 = vmatpush.msra.mxu0 %v1415_v60 }
 0x898   : > { %1439 = vmatpush.msra.mxu0 %v1414_v62 }
 0x899   : > { %v1642_v57 = vpop.eup %1641 }
 0x89a   : > { %v1357_v59 = vmul.f32 %v1642_v57, %v1355_v53  ;;  %vm1363_vm5 = vweird.f32 %v1642_v57  ;;  %1440 = vmatpush.msra.mxu0 %v1413_v1 }
 0x89b   : > { %vm1364_vm12 = vmor %vm1362_vm11, %vm1363_vm5 }
 0x89c   : > { %v1358_v61 = vmul.f32 %v1642_v57, %v1357_v59  ;;  %1441 = vmatpush.msra.mxu0 %v1412_v3 }
 0x89e   : > { %v1359_v63 = vmul.f32 0.5, %v1358_v61  ;;  %1442 = vmatpush.msra.mxu0 %v1411_v12 }
 0x8a0   : > { %v1360_v2 = vsub.f32 1.5, %v1359_v63  ;;  %1443 = vmatpush.msra.mxu0 %v1410_v13 }
 0x8a2   : > { %v1361_v4 = vmul.f32 %v1642_v57, %v1360_v2  ;;  %1444 = vmatpush.msra.mxu0 %v1409_v14 }
 0x8a4   : > { %v1365_v6 = vsel %vm1364_vm12, %v1642_v57, %v1361_v4 }
 0x8a5   : > { %v1366_v7 = vmul.f32 %v1365_v6, %v1349_v41 }
 0x8a7   : > { %v1371_v10 = vmul.f32 %v1617_v5, %v1366_v7 }
 0x8a9   : > { %v1376_v11 = vadd.f32 %v1618_v9, %v1371_v10 }
 0x8ab   : > { %1546 = vmatmul.msk.f32.vlgmr.msra.gmra.mxu3 %vm410_vm0, %v1376_v11 }
 0x92e   : > { %v1405_v16 = vpop.f32.mrf.mxu3 }
 0x92f   : > { %v1406_v17 = vadd.f32 %v1619_v15, %v1405_v16 }
 0x931   : > { %v1408_v18 = vmax.f32 %v1406_v17, 0.0 }
 0x933   : > { %1445 = vmatmul.f32.vlgmr.msra.gmra.mxu0 %v1408_v18 }
 0x9b0   : > { %v1446_v20 = vpop.f32.mrf.mxu0 }
 0x9b1   : > { %v1447_v21 = vadd.f32 %v1620_v19, %v1446_v20 }
 0x9b3   : > { %v1449_v22 = vadd.f32 %v1447_v21, %v1948_v37 }
 0x9b5   : > { %1450 = vst.msk [vmem:[%s404_s1] sm:$0xff] %vm410_vm0, %v1449_v22 }
 0x9b6   : > { %1670 = shalt.err (!%p1667_p3)
}
 0x9b7   : > { %1551 = dma.vmem_to_hbm [thread:$0]  (%p1821_p5), %s1465_s18, 128, %s1467_s19, %s1452_s25  }
 0x9b8 PF: > { %p1557_p4 = scmp.ge.s32.totalorder %s1705_s24, 2  ;;  %s1478_s1 = sand.u32 1, %s1693_s21  }
 0x9b9   : > { %s1479_s0 = scalar_lea.sflag [#allocation3], %s1478_s1 }
 0x9ba   : > { %p1554_p7 = pnand %p1557_p4, %p1825_p6 }
 0x9bc   : > { %p1555_p8 = pneg %p1554_p7 }
 0x9be   : > { %1688 = dma.done.wait (%p1555_p8), %s1479_s0, 128  }
 0x9bf   : > { %1690 = vsyncadd (%p1555_p8), %s1479_s0, 4294967168  ;;  %p22_p9 = scmp.ge.s32.totalorder %s1808_s27, 4   ;;  %s2084_s21 = smov %s1697_s22 }
 0x9c0   : > { %s2085_s22 = smov %s1701_s23  ;;  %s2086_s23 = smov %s1819_s30 }
 0x9c1   : > { %s2087_s24 = smov %s1808_s27  ;;  %24 = sbr.rel (!%p22_p9) target bundleno = 7 (0x7), region = 103 }
 0x9c6   :  { %1485 = vsyncpa [#allocation3], 1 }
 0x9c7   :  { %1487 = vsyncpa [#allocation3 + $0x1], 1 }

</bundles_post_ra>
